<compile_context>
chip_gen: v6e
topology: v6e:2x2x1
jax: 0.10.0
libtpu: 0.0.40
codegen_flags: <defaults>
</compile_context>

<pallas_src>
import jax
import jax.numpy as jnp
from jax.experimental import pallas as pl
from jax.experimental.pallas import tpu as pltpu


# --------------------------------------------------------------------------
# Kernel body (shared by the 1-D row-grid and 2-D row x column-grid paths).
# --------------------------------------------------------------------------
def _rotate_kernel(x_ref, w_ref, o_ref):
    # In-kernel cast of the activation to the weight dtype (mirrors torch's
    # x.to(weight.dtype)); accumulate in f32 on the MXU, store in W's dtype.
    x = x_ref[...].astype(w_ref.dtype)
    o_ref[...] = jnp.dot(
        x, w_ref[...], preferred_element_type=jnp.float32
    ).astype(o_ref.dtype)


# --------------------------------------------------------------------------
# Helpers.
# --------------------------------------------------------------------------
def _round_up(v, m):
    return ((v + m - 1) // m) * m


def _sublane(itemsize):
    return {4: 8, 2: 16, 1: 32}.get(itemsize, 8)


def _vmem_capacity_bytes():
    """Per-core VMEM capacity; conservative (v7x per-TC) fallback."""
    try:
        return int(pltpu.get_tpu_info().vmem_capacity_bytes)
    except Exception:
        return 64 * 1024 * 1024


def _choose_tm_1d(M, n, x_bytes, o_bytes, w_bytes, vmem_cap):
    """Row-tile size for the resident-weight (1-D grid) path."""
    sub = max(_sublane(x_bytes), _sublane(o_bytes))
    per_row = n * (x_bytes + o_bytes)
    # Per-step DMA target: ~2 MiB on 64 MiB-VMEM parts (v7x), ~4 MiB when
    # there is more headroom (v5e/v6e, 128 MiB VMEM).
    target = (4 << 20) if vmem_cap >= (96 << 20) else (2 << 20)
    tm = _round_up(max(256, pl.cdiv(target, per_row)), sub)
    # VMEM clamp: resident (single-buffered) weight + double-buffered x / out
    # row tiles must stay under ~70% of per-core VMEM.
    budget = int(vmem_cap * 0.7)
    avail = budget - n * n * w_bytes
    if avail > 0:
        tm_cap = max(sub, avail // (2 * per_row))
        tm = max(sub, min(tm, (tm_cap // sub) * sub))
    if M <= tm:
        if M >= 512:
            # Split so grid_m >= 2: lets v7x shard the "parallel" row axis
            # across both TensorCores (no effect on single-TC v5e/v6e).
            tm = _round_up(pl.cdiv(M, 2), sub)
        else:
            tm = M
    return tm


def _choose_tiles_2d(M, n, x_bytes, o_bytes, w_bytes, vmem_cap):
    """Tile sizes for the column-tiled (large-n weight) path."""
    sub = max(_sublane(x_bytes), _sublane(o_bytes))
    budget = int(vmem_cap * 0.7)
    # Output-column tile: multiple of 256 feeds the 256x256 MXU on v6e/v7x
    # (128 also fine on v5e); shrink until the double-buffered weight column
    # tile uses at most half the budget.
    tn = 512
    while tn > 128 and 2 * n * tn * w_bytes > budget // 2:
        tn //= 2
    tn = min(tn, n)
    # Row tile: fill the remaining budget with double-buffered x / out tiles.
    remaining = max(0, budget - 2 * n * tn * w_bytes)
    per_row = 2 * (n * x_bytes + tn * o_bytes)
    tm_cap = max(sub, remaining // max(per_row, 1))
    tm = min(_round_up(512, sub), (tm_cap // sub) * sub)
    tm = max(sub, min(tm, _round_up(M, sub)))
    return tm, tn


# --------------------------------------------------------------------------
# pallas_call builders.
# --------------------------------------------------------------------------
def _build_rotate_call_1d(M, n, tm, x_dtype, w_dtype, vmem_cap,
                          single_buffer_weight):
    grid_m = pl.cdiv(M, tm)
    x_bytes = jnp.dtype(x_dtype).itemsize
    w_bytes = jnp.dtype(w_dtype).itemsize

    if single_buffer_weight:
        # The weight block index is constant across the grid -> one resident
        # copy is enough (halves its footprint; matters on v7x's 64 MiB VMEM).
        w_spec = pl.BlockSpec((n, n), lambda i: (0, 0),
                              pipeline_mode=pl.Buffered(1))
        w_copies = 1
    else:
        w_spec = pl.BlockSpec((n, n), lambda i: (0, 0))
        w_copies = 2

    vmem_est = (w_copies * n * n * w_bytes
                + 2 * tm * n * x_bytes
                + 2 * tm * n * w_bytes)
    # Device-derived scoped-VMEM limit with headroom (never above physical).
    vmem_limit = int(min(max(int(vmem_est * 1.25), 32 << 20),
                         int(vmem_cap * 0.85)))

    cost = pl.CostEstimate(
        flops=2 * M * n * n,
        transcendentals=0,
        bytes_accessed=M * n * x_bytes + n * n * w_bytes + M * n * w_bytes,
    )

    return pl.pallas_call(
        _rotate_kernel,
        out_shape=jax.ShapeDtypeStruct((M, n), w_dtype),
        grid_spec=pltpu.PrefetchScalarGridSpec(
            num_scalar_prefetch=0,
            grid=(grid_m,),
            in_specs=[
                pl.BlockSpec((tm, n), lambda i: (i, 0)),  # row tile of x
                w_spec,                                   # full weight, resident
            ],
            out_specs=pl.BlockSpec((tm, n), lambda i: (i, 0)),
        ),
        compiler_params=pltpu.CompilerParams(
            dimension_semantics=("parallel",),
            vmem_limit_bytes=vmem_limit,
        ),
        cost_estimate=cost,
    )


def _build_rotate_call_2d(M, n, tm, tn, x_dtype, w_dtype, vmem_cap):
    grid = (pl.cdiv(M, tm), pl.cdiv(n, tn))
    x_bytes = jnp.dtype(x_dtype).itemsize
    w_bytes = jnp.dtype(w_dtype).itemsize

    vmem_est = (2 * tm * n * x_bytes      # x row slab (double-buffered)
                + 2 * n * tn * w_bytes    # weight column tile
                + 2 * tm * tn * w_bytes)  # output tile
    vmem_limit = int(min(max(int(vmem_est * 1.25), 32 << 20),
                         int(vmem_cap * 0.85)))

    cost = pl.CostEstimate(
        flops=2 * M * n * n,
        transcendentals=0,
        bytes_accessed=(M * n * x_bytes
                        + grid[0] * n * n * w_bytes   # W re-read per row tile
                        + M * n * w_bytes),
    )

    return pl.pallas_call(
        _rotate_kernel,
        out_shape=jax.ShapeDtypeStruct((M, n), w_dtype),
        grid_spec=pltpu.PrefetchScalarGridSpec(
            num_scalar_prefetch=0,
            grid=grid,
            in_specs=[
                # x row slab: block index constant across the (inner) column
                # axis -> stays resident while W column tiles stream through.
                pl.BlockSpec((tm, n), lambda i, j: (i, 0)),
                pl.BlockSpec((n, tn), lambda i, j: (0, j)),
            ],
            out_specs=pl.BlockSpec((tm, tn), lambda i, j: (i, j)),
        ),
        compiler_params=pltpu.CompilerParams(
            dimension_semantics=("parallel", "parallel"),
            vmem_limit_bytes=vmem_limit,
        ),
        cost_estimate=cost,
    )


def _run_1d(M, n, tm, x2d, weight, vmem_cap):
    try:
        call = _build_rotate_call_1d(M, n, tm, x2d.dtype, weight.dtype,
                                     vmem_cap, single_buffer_weight=True)
        return call(x2d, weight)
    except Exception:
        # Narrow purpose: only cover a Pallas version rejecting
        # pipeline_mode=pl.Buffered(1) on a constant-index block.  The
        # fallback (default double-buffered weight) only changes the VMEM
        # footprint; very large weights never reach this path -- they are
        # routed to the column-tiled 2-D grid instead.
        call = _build_rotate_call_1d(M, n, tm, x2d.dtype, weight.dtype,
                                     vmem_cap, single_buffer_weight=False)
        return call(x2d, weight)


# --------------------------------------------------------------------------
# Public wrapper.
# --------------------------------------------------------------------------
def rotate_layer(x, weight, *, tm=None, tn=None, use_pallas=None,
                 column_tiling=None):
    """y = matmul(x.to(weight.dtype), weight);  x: [..., n], weight: [n, n].

    Notes:
      * The x -> weight.dtype cast happens inside the kernel (correct per the
        wrapper-pre-cast anti-pattern).  Bandwidth fast path: if the caller
        can provide x already in bf16 when weight is bf16, the HBM read
        traffic for x halves (the kernel is HBM-bound on x for n <~ 2k).
      * Non-128-multiple n is routed to plain XLA by default (lane-dense
        output stores were the single biggest measured wall-clock lever).
    """
    n = weight.shape[0]
    assert weight.shape == (n, n)
    assert x.shape[-1] == n

    lead_shape = x.shape[:-1]
    x2d = x.reshape(-1, n)        # no wrapper-side dtype cast -- done in-kernel
    M = x2d.shape[0]
    out_dtype = weight.dtype
    x_bytes = jnp.dtype(x2d.dtype).itemsize
    w_bytes = jnp.dtype(out_dtype).itemsize
    vmem_cap = _vmem_capacity_bytes()

    if use_pallas is None:
        lane_dense = (n >= 128) and (n % 128 == 0)
        big_enough = (M * n * x_bytes >= (1 << 20)) or (M >= 1024)
        use_pallas = lane_dense and big_enough

    if not use_pallas:
        y = jnp.matmul(x2d.astype(out_dtype), weight)
        return y.reshape(*lead_shape, n)

    if column_tiling is None:
        # Weight too big to sit resident (plus pipelined activations) in this
        # generation's VMEM -> tile its output columns instead.
        column_tiling = (n * n * w_bytes > vmem_cap // 4)

    if column_tiling:
        auto_tm, auto_tn = _choose_tiles_2d(M, n, x_bytes, w_bytes, w_bytes,
                                            vmem_cap)
        tm = auto_tm if tm is None else tm
        tn = auto_tn if tn is None else tn
        tm = min(tm, M)
        tn = min(tn, n)
        call = _build_rotate_call_2d(M, n, tm, tn, x2d.dtype, out_dtype,
                                     vmem_cap)
        out = call(x2d, weight)
    else:
        if tm is None:
            tm = _choose_tm_1d(M, n, x_bytes, w_bytes, w_bytes, vmem_cap)
        tm = min(tm, M)
        out = _run_1d(M, n, tm, x2d, weight, vmem_cap)

    return out.reshape(*lead_shape, n)


def make_orthogonal_weight(key, n, dtype=jnp.float32):
    """Deterministic orthogonal init (mirrors torch.nn.init.orthogonal_)."""
    # TODO(synk): parameter init stays host-side (QR); no in-kernel equivalent.
    a = jax.random.normal(key, (n, n), dtype=jnp.float32)
    q, r = jnp.linalg.qr(a)
    d = jnp.diag(r)
    q = q * jnp.where(d >= 0, 1.0, -1.0)[None, :]
    return q.astype(dtype)


if __name__ == "__main__":
    key = jax.random.PRNGKey(0)
    k_w1, k_x1, k_w2, k_x2, k_w3, k_x3 = jax.random.split(key, 6)
    HI = jax.lax.Precision.HIGHEST

    # --- Case 1: module-sized demo (hidden n=32, batch=2, seq=8), f32 weight,
    #             kernel path forced (full-array blocks, masked stores).
    n1 = 32
    w1 = make_orthogonal_weight(k_w1, n1, dtype=jnp.float32)
    x1 = jax.random.normal(k_x1, (2, 8, n1), jnp.float32)

    y1 = jax.block_until_ready(rotate_layer(x1, w1, use_pallas=True))
    y1_ref = jnp.matmul(x1.astype(w1.dtype), w1, precision=HI)
    assert y1.shape == (2, 8, n1)
    assert jnp.allclose(y1, y1_ref, atol=1e-3, rtol=1e-3), "case1 f32 mismatch"

    # Default heuristic routes this tiny shape to plain XLA (lane-dense rule).
    y1_auto = jax.block_until_ready(rotate_layer(x1, w1))
    assert y1_auto.shape == (2, 8, n1)
    assert jnp.allclose(y1_auto, y1_ref, atol=2e-2, rtol=2e-2), "case1 auto mismatch"

    # --- Case 2: multi-step row grid (n=128, M=96, tm=32 -> 3 grid steps),
    #             bf16 weight with f32 activations (in-kernel cast path).
    n2 = 128
    w2 = make_orthogonal_weight(k_w2, n2, dtype=jnp.bfloat16)
    x2 = jax.random.normal(k_x2, (2, 48, n2), jnp.float32)

    y2 = jax.block_until_ready(rotate_layer(x2, w2, tm=32, use_pallas=True))
    y2_ref = jnp.matmul(x2.astype(w2.dtype), w2)
    assert y2.shape == (2, 48, n2)
    assert y2.dtype == jnp.bfloat16
    assert jnp.allclose(y2.astype(jnp.float32), y2_ref.astype(jnp.float32),
                        atol=1e-1, rtol=1e-1), "case2 bf16 mismatch"

    # --- Case 3: column-tiled (2-D grid) path used for large-n weights,
    #             validated here at a small shape (n=256, tm=64, tn=128 -> 2x2 grid).
    n3 = 256
    w3 = make_orthogonal_weight(k_w3, n3, dtype=jnp.float32)
    x3 = jax.random.normal(k_x3, (2, 64, n3), jnp.float32)

    y3 = jax.block_until_ready(rotate_layer(x3, w3, tm=64, tn=128,
                                            use_pallas=True, column_tiling=True))
    y3_ref = jnp.matmul(x3, w3, precision=HI)
    assert y3.shape == (2, 64, n3)
    assert jnp.allclose(y3, y3_ref, atol=1e-3, rtol=1e-3), "case3 2-D grid mismatch"

    print("KERNEL_OK")
</pallas_src>

<mosaic_0001>
module attributes {stable_mosaic.version = 11 : i64} {
  func.func @_rotate_kernel(%arg0: i32, %arg1: memref<16x32xf32, #tpu.memory_space<vmem>>, %arg2: memref<32x32xf32, #tpu.memory_space<vmem>>, %arg3: memref<16x32xf32, #tpu.memory_space<vmem>>) attributes {dimension_semantics = [#tpu.dimension_semantics<parallel>], iteration_bounds = array<i64: 1>, scalar_prefetch = 0 : i64, scratch_operands = 0 : i64, tpu.core_type = #tpu.core_type<tc>, window_params = [{transform_indices = @transform_0, window_bounds = array<i64: 16, 32>}, {pipeline_mode = #tpu.pipeline_mode<synchronous>, transform_indices = @transform_1, window_bounds = array<i64: 32, 32>}, {transform_indices = @transform_2, window_bounds = array<i64: 16, 32>}]} {
    %c0 = arith.constant 0 : index
    %c0_0 = arith.constant 0 : index
    %0 = vector.load %arg1[%c0, %c0_0] : memref<16x32xf32, #tpu.memory_space<vmem>>, vector<16x32xf32>
    %c0_1 = arith.constant 0 : index
    %c0_2 = arith.constant 0 : index
    %1 = vector.load %arg2[%c0_1, %c0_2] : memref<32x32xf32, #tpu.memory_space<vmem>>, vector<32x32xf32>
    %cst = arith.constant dense<0.000000e+00> : vector<16x32xf32>
    %2 = tpu.matmul %0, %1, %cst {dimension_numbers = #tpu.dot_dimension_numbers<[1], [0], [0], [1], [0, 0, 1, 1], [], []>} : vector<16x32xf32>, vector<32x32xf32>, vector<16x32xf32> -> vector<16x32xf32>
    %c0_3 = arith.constant 0 : index
    %c0_4 = arith.constant 0 : index
    %3 = vector.load %arg3[%c0_3, %c0_4] : memref<16x32xf32, #tpu.memory_space<vmem>>, vector<16x32xf32>
    tpu.vector_store %arg3[%c0_3, %c0_4], %2 {strides = array<i32>} : memref<16x32xf32, #tpu.memory_space<vmem>>, vector<16x32xf32>,
    return
  }
  func.func @transform_0(%arg0: i32) -> (i32, i32) {
    %c0_i32 = arith.constant 0 : i32
    %c0_i32_0 = arith.constant 0 : i32
    return %arg0, %c0_i32 : i32, i32
  }
  func.func @transform_1(%arg0: i32) -> (i32, i32) {
    %c0_i32 = arith.constant 0 : i32
    %c0_i32_0 = arith.constant 0 : i32
    %c0_i32_1 = arith.constant 0 : i32
    return %c0_i32, %c0_i32_0 : i32, i32
  }
  func.func @transform_2(%arg0: i32) -> (i32, i32) {
    %c0_i32 = arith.constant 0 : i32
    %c0_i32_0 = arith.constant 0 : i32
    return %arg0, %c0_i32 : i32, i32
  }
}

module attributes {stable_mosaic.version = 11 : i64} {
  func.func @_rotate_kernel(%arg0: i32, %arg1: memref<16x32xf32, #tpu.memory_space<vmem>>, %arg2: memref<32x32xf32, #tpu.memory_space<vmem>>, %arg3: memref<16x32xf32, #tpu.memory_space<vmem>>) attributes {dimension_semantics = [#tpu.dimension_semantics<parallel>], iteration_bounds = array<i64: 1>, scalar_prefetch = 0 : i64, scratch_operands = 0 : i64, tpu.core_type = #tpu.core_type<tc>, window_params = [{transform_indices = @transform_0, window_bounds = array<i64: 16, 32>}, {pipeline_mode = #tpu.pipeline_mode<synchronous>, transform_indices = @transform_1, window_bounds = array<i64: 32, 32>}, {transform_indices = @transform_2, window_bounds = array<i64: 16, 32>}]} {
    %c0 = arith.constant 0 : index
    %c0_0 = arith.constant 0 : index
    %0 = vector.load %arg1[%c0, %c0_0] : memref<16x32xf32, #tpu.memory_space<vmem>>, vector<16x32xf32>
    %c0_1 = arith.constant 0 : index
    %c0_2 = arith.constant 0 : index
    %1 = vector.load %arg2[%c0_1, %c0_2] : memref<32x32xf32, #tpu.memory_space<vmem>>, vector<32x32xf32>
    %cst = arith.constant dense<0.000000e+00> : vector<16x32xf32>
    %2 = tpu.matmul %0, %1, %cst {dimension_numbers = #tpu.dot_dimension_numbers<[1], [0], [0], [1], [0, 0, 1, 1], [], []>} : vector<16x32xf32>, vector<32x32xf32>, vector<16x32xf32> -> vector<16x32xf32>
    %c0_3 = arith.constant 0 : index
    %c0_4 = arith.constant 0 : index
    %3 = vector.load %arg3[%c0_3, %c0_4] : memref<16x32xf32, #tpu.memory_space<vmem>>, vector<16x32xf32>
    tpu.vector_store %arg3[%c0_3, %c0_4], %2 {strides = array<i32>} : memref<16x32xf32, #tpu.memory_space<vmem>>, vector<16x32xf32>,
    return
  }
  func.func @transform_0(%arg0: i32) -> (i32, i32) {
    %c0_i32 = arith.constant 0 : i32
    %c0_i32_0 = arith.constant 0 : i32
    return %arg0, %c0_i32 : i32, i32
  }
  func.func @transform_1(%arg0: i32) -> (i32, i32) {
    %c0_i32 = arith.constant 0 : i32
    %c0_i32_0 = arith.constant 0 : i32
    %c0_i32_1 = arith.constant 0 : i32
    return %c0_i32, %c0_i32_0 : i32, i32
  }
  func.func @transform_2(%arg0: i32) -> (i32, i32) {
    %c0_i32 = arith.constant 0 : i32
    %c0_i32_0 = arith.constant 0 : i32
    return %arg0, %c0_i32 : i32, i32
  }
}

</mosaic_0001>

<bundles_post_ra>
// kernel: tpu_custom_call.1
= control target key start
LH: loop header
LB: loop body
LE: loop exit
PB: predicated region body
PF: predicated region fallthrough
CT: control target
= control target key end

     0   :  { %7 = vsyncpa [#allocation3], 0  ;;  %s280_s0 = inlined_call_operand.hbm [shape: f32[16,32], index: 0, kind: input, shape index: {}]   ;;  %s281_s1 = inlined_call_operand.hbm [shape: f32[32,32], index: 1, kind: input, shape index: {}]   ;;  %s282_s2 = inlined_call_operand.hbm [shape: f32[16,32], index: 2, kind: output, shape index: {}]  }
   0x1   :  { %8 = vsyncpa [#allocation6], 0 }
   0x2   :  { %9 = vsyncpa [#allocation4], 0  ;;  %s238_s9 = smov [#allocation2]  }
   0x3   :  { %s15_s10 = sshll.u32 %s238_s9, 4  ;;  %s16_s10 = int_to_ptr.vmem [resolvable:$true] %s15_s10 }
   0x4   :  { %s180_s11 = scalar_lea.vmem %s16_s10, 256  ;;  %p185_p1 = scmp.lt.s32.totalorder %s16_s10, %s16_s10 }
   0x5   :  { %p181_p0 = scmp.ne.s32.totalorder %s16_s10, %s180_s11  ;;  %p186_p2 = scmp.lt.s32.totalorder %s180_s11, %s180_s11 }
   0x7   :  { %p187_p3 = por %p186_p2, %p185_p1 }
   0x9   :  { %p188_p4 = pnand %p187_p3, %p181_p0 }
   0xb   :  { %191 = shalt.err (!%p188_p4)
}
   0xc   :  { %s239_s12 = smov 128   ;;  %s240_s13 = smov 8  }
   0xd   :  { %21 = dma.hbm_to_vmem [thread:$0]  %s280_s0, 256, %s16_s10, [#allocation3], %s239_s12, %s239_s12, %s240_s13  }
   0xe   :  { %s241_s16 = smov [#allocation5]  }
   0xf   :  { %s27_s17 = sshll.u32 %s241_s16, 4  ;;  %s28_s17 = int_to_ptr.vmem [resolvable:$true] %s27_s17 }
  0x10   :  { %s200_s18 = scalar_lea.vmem %s28_s17, 512  ;;  %p205_p6 = scmp.lt.s32.totalorder %s28_s17, %s28_s17 }
  0x11   :  { %p201_p5 = scmp.ne.s32.totalorder %s28_s17, %s200_s18  ;;  %p206_p7 = scmp.lt.s32.totalorder %s200_s18, %s200_s18 }
  0x13   :  { %p207_p8 = por %p206_p7, %p205_p6 }
  0x15   :  { %p208_p9 = pnand %p207_p8, %p201_p5 }
  0x17   :  { %211 = shalt.err (!%p208_p9)
}
  0x18   :  { %33 = dma.hbm_to_vmem [thread:$0]  %s281_s1, 512, %s28_s17, [#allocation6], %s239_s12, %s239_s12, %s240_s13  }
  0x19   :  { %232 = dma.done.wait [#allocation3], 256  }
  0x1a   :  { %233 = vsyncadd [#allocation3], 4294967040 }
  0x1b   :  { %234 = dma.done.wait [#allocation6], 512  }
  0x1c   :  { %235 = vsyncadd [#allocation6], 4294966784  ;;  %vm46_vm0 = vcmask 261120   ;;  %v45_v0 = vld [vmem:[#allocation5 + $0x18] sm:$0xff]  ;;  %v44_v1 = vld [vmem:[#allocation5 + $0x10] sm:$0xff]  ;;  %s242_s0 = smov [#allocation7]  }
  0x1d   :  { %156 = vmatprep.subr.mxu0 %v45_v0  ;;  %v40_v2 = vld [vmem:[#allocation2] sm:$0xff]  ;;  %v43_v3 = vld [vmem:[#allocation5 + $0x8] sm:$0xff]  ;;  %v42_v4 = vld [vmem:[#allocation5] sm:$0xff]  ;;  %s135_s1 = sshll.u32 %s242_s0, 4  ;;  %s136_s1 = int_to_ptr.vmem [resolvable:$true] %s135_s1 }
  0x1e   :  { %157 = vmatpush3.msra.mxu0 %v45_v0  ;;  %164 = vmatprep.mubr.msk.f32.mxu0 %vm46_vm0, %v40_v2  ;;  %v41_v5 = vld [vmem:[#allocation2 + $0x8] sm:$0xff]  ;;  %s212_s21 = scalar_lea.vmem %s136_s1, 256  ;;  %p217_p11 = scmp.lt.s32.totalorder %s136_s1, %s136_s1 }
  0x1f   :  { %158 = vmatprep.subr.mxu0 %v44_v1  ;;  %p213_p10 = scmp.ne.s32.totalorder %s136_s1, %s212_s21  ;;  %p218_p12 = scmp.lt.s32.totalorder %s212_s21, %s212_s21 }
  0x20   :  { %159 = vmatpush3.msra.mxu0 %v44_v1 }
  0x21   :  { %160 = vmatprep.subr.mxu0 %v43_v3  ;;  %p219_p13 = por %p218_p12, %p217_p11 }
  0x22   :  { %161 = vmatpush3.msra.mxu0 %v43_v3 }
  0x23   :  { %162 = vmatprep.subr.mxu0 %v42_v4  ;;  %p220_p0 = pnand %p219_p13, %p213_p10 }
  0x24   :  { %163 = vmatpush3.msra.mxu0 %v42_v4 }
  0x25   :  { %165 = vmatmul.mubr.msk.f32.vlgmr.msra.gmra.mxu0 %vm46_vm0, %v41_v5 }
  0xe5   :  { %v166_v6 = vpop.f32.mrf.mxu0 }
  0xe6   :  { %129 = vst.msk [vmem:[#allocation7 + $0x8] sm:$0xff] %vm46_vm0, %v166_v6 }
  0xe7   :  { %v119_v7 = vpop.f32.mrf.mxu0 }
  0xe8   :  { %128 = vst.msk [vmem:[#allocation7] sm:$0xff] %vm46_vm0, %v119_v7 }
  0xe9   :  { %223 = shalt.err (!%p220_p0)
}
  0xea   :  { %141 = dma.vmem_to_hbm [thread:$0]  %s136_s1, 256, %s282_s2, [#allocation4], %s239_s12, %s239_s12, %s240_s13  }
  0xeb   :  { %236 = dma.done.wait [#allocation4], 256  }
  0xec   :  { %237 = vsyncadd [#allocation4], 4294967040 }
  0xed   :  { %145 = vsyncpa [#allocation3], 1 }
  0xee   :  { %146 = vsyncpa [#allocation6], 1 }
  0xef   :  { %147 = vsyncpa [#allocation4], 1 }

// kernel: tpu_custom_call.1
= control target key start
LH: loop header
LB: loop body
LE: loop exit
PB: predicated region body
PF: predicated region fallthrough
CT: control target
= control target key end

     0   :  { %7 = vsyncpa [#allocation3], 0  ;;  %s280_s0 = inlined_call_operand.hbm [shape: f32[16,32], index: 0, kind: input, shape index: {}]   ;;  %s281_s1 = inlined_call_operand.hbm [shape: f32[32,32], index: 1, kind: input, shape index: {}]   ;;  %s282_s2 = inlined_call_operand.hbm [shape: f32[16,32], index: 2, kind: output, shape index: {}]  }
   0x1   :  { %8 = vsyncpa [#allocation6], 0 }
   0x2   :  { %9 = vsyncpa [#allocation4], 0  ;;  %s238_s9 = smov [#allocation2]  }
   0x3   :  { %s15_s10 = sshll.u32 %s238_s9, 4  ;;  %s16_s10 = int_to_ptr.vmem [resolvable:$true] %s15_s10 }
   0x4   :  { %s180_s11 = scalar_lea.vmem %s16_s10, 256  ;;  %p185_p1 = scmp.lt.s32.totalorder %s16_s10, %s16_s10 }
   0x5   :  { %p181_p0 = scmp.ne.s32.totalorder %s16_s10, %s180_s11  ;;  %p186_p2 = scmp.lt.s32.totalorder %s180_s11, %s180_s11 }
   0x7   :  { %p187_p3 = por %p186_p2, %p185_p1 }
   0x9   :  { %p188_p4 = pnand %p187_p3, %p181_p0 }
   0xb   :  { %191 = shalt.err (!%p188_p4)
}
   0xc   :  { %s239_s12 = smov 128   ;;  %s240_s13 = smov 8  }
   0xd   :  { %21 = dma.hbm_to_vmem [thread:$0]  %s280_s0, 256, %s16_s10, [#allocation3], %s239_s12, %s239_s12, %s240_s13  }
   0xe   :  { %s241_s16 = smov [#allocation5]  }
   0xf   :  { %s27_s17 = sshll.u32 %s241_s16, 4  ;;  %s28_s17 = int_to_ptr.vmem [resolvable:$true] %s27_s17 }
  0x10   :  { %s200_s18 = scalar_lea.vmem %s28_s17, 512  ;;  %p205_p6 = scmp.lt.s32.totalorder %s28_s17, %s28_s17 }
  0x11   :  { %p201_p5 = scmp.ne.s32.totalorder %s28_s17, %s200_s18  ;;  %p206_p7 = scmp.lt.s32.totalorder %s200_s18, %s200_s18 }
  0x13   :  { %p207_p8 = por %p206_p7, %p205_p6 }
  0x15   :  { %p208_p9 = pnand %p207_p8, %p201_p5 }
  0x17   :  { %211 = shalt.err (!%p208_p9)
}
  0x18   :  { %33 = dma.hbm_to_vmem [thread:$0]  %s281_s1, 512, %s28_s17, [#allocation6], %s239_s12, %s239_s12, %s240_s13  }
  0x19   :  { %232 = dma.done.wait [#allocation3], 256  }
  0x1a   :  { %233 = vsyncadd [#allocation3], 4294967040 }
  0x1b   :  { %234 = dma.done.wait [#allocation6], 512  }
  0x1c   :  { %235 = vsyncadd [#allocation6], 4294966784  ;;  %vm46_vm0 = vcmask 261120   ;;  %v45_v0 = vld [vmem:[#allocation5 + $0x18] sm:$0xff]  ;;  %v44_v1 = vld [vmem:[#allocation5 + $0x10] sm:$0xff]  ;;  %s242_s0 = smov [#allocation7]  }
  0x1d   :  { %156 = vmatprep.subr.mxu0 %v45_v0  ;;  %v40_v2 = vld [vmem:[#allocation2] sm:$0xff]  ;;  %v43_v3 = vld [vmem:[#allocation5 + $0x8] sm:$0xff]  ;;  %v42_v4 = vld [vmem:[#allocation5] sm:$0xff]  ;;  %s135_s1 = sshll.u32 %s242_s0, 4  ;;  %s136_s1 = int_to_ptr.vmem [resolvable:$true] %s135_s1 }
  0x1e   :  { %157 = vmatpush3.msra.mxu0 %v45_v0  ;;  %164 = vmatprep.mubr.msk.f32.mxu0 %vm46_vm0, %v40_v2  ;;  %v41_v5 = vld [vmem:[#allocation2 + $0x8] sm:$0xff]  ;;  %s212_s21 = scalar_lea.vmem %s136_s1, 256  ;;  %p217_p11 = scmp.lt.s32.totalorder %s136_s1, %s136_s1 }
  0x1f   :  { %158 = vmatprep.subr.mxu0 %v44_v1  ;;  %p213_p10 = scmp.ne.s32.totalorder %s136_s1, %s212_s21  ;;  %p218_p12 = scmp.lt.s32.totalorder %s212_s21, %s212_s21 }
  0x20   :  { %159 = vmatpush3.msra.mxu0 %v44_v1 }
  0x21   :  { %160 = vmatprep.subr.mxu0 %v43_v3  ;;  %p219_p13 = por %p218_p12, %p217_p11 }
  0x22   :  { %161 = vmatpush3.msra.mxu0 %v43_v3 }
  0x23   :  { %162 = vmatprep.subr.mxu0 %v42_v4  ;;  %p220_p0 = pnand %p219_p13, %p213_p10 }
  0x24   :  { %163 = vmatpush3.msra.mxu0 %v42_v4 }
  0x25   :  { %165 = vmatmul.mubr.msk.f32.vlgmr.msra.gmra.mxu0 %vm46_vm0, %v41_v5 }
  0xe5   :  { %v166_v6 = vpop.f32.mrf.mxu0 }
  0xe6   :  { %129 = vst.msk [vmem:[#allocation7 + $0x8] sm:$0xff] %vm46_vm0, %v166_v6 }
  0xe7   :  { %v119_v7 = vpop.f32.mrf.mxu0 }
  0xe8   :  { %128 = vst.msk [vmem:[#allocation7] sm:$0xff] %vm46_vm0, %v119_v7 }
  0xe9   :  { %223 = shalt.err (!%p220_p0)
}
  0xea   :  { %141 = dma.vmem_to_hbm [thread:$0]  %s136_s1, 256, %s282_s2, [#allocation4], %s239_s12, %s239_s12, %s240_s13  }
  0xeb   :  { %236 = dma.done.wait [#allocation4], 256  }
  0xec   :  { %237 = vsyncadd [#allocation4], 4294967040 }
  0xed   :  { %145 = vsyncpa [#allocation3], 1 }
  0xee   :  { %146 = vsyncpa [#allocation6], 1 }
  0xef   :  { %147 = vsyncpa [#allocation4], 1 }

</bundles_post_ra>
